<compile_context>
chip_gen: v6e
topology: v6e:2x2x1
jax: 0.10.0
libtpu: 0.0.40
codegen_flags: <defaults>
</compile_context>

<pallas_src>
import functools

import jax
import jax.numpy as jnp
from jax.experimental import pallas as pl
from jax.experimental.pallas import tpu as pltpu


def _round_up(x, m):
    return ((x + m - 1) // m) * m


def _cgbrbm_kernel(nvis_p, nhid_p,
                   vu_ref, rh_ref, rv_ref, wh_ref, c_ref, wv_ref, b_ref,
                   out_ref, hu_ref):
    """One batch tile of the CGBRBM forward pass.

    vu_ref : (TB, nvis_p + ncond_p) f32   [v | u] concatenated, zero padded
    rh_ref : (TB, nhid_p)           f32   uniforms for hidden Bernoulli draw
    rv_ref : (TB, nvis_p)           f32   uniforms for visible Bernoulli draw
    wh_ref : (nvis_p + ncond_p, nhid_p) bf16  stacked [W ; B]
    c_ref  : (1, nhid_p)            f32   hidden bias
    wv_ref : (nhid_p + ncond_p, nvis_p) bf16  stacked [W.T ; A]
    b_ref  : (1, nvis_p)            f32   visible bias
    out_ref: (TB, nvis_p)           f32   v1_sample
    hu_ref : (TB, nhid_p + ncond_p) bf16  scratch holding [h1_sample | u]
    """
    vu = vu_ref[...].astype(jnp.bfloat16)

    # ---- sample_h_given_vu: sigmoid(v @ W + u @ B + c), Bernoulli ----
    pre_h = jnp.dot(vu, wh_ref[...], preferred_element_type=jnp.float32) + c_ref[...]
    h1_mean = jax.nn.sigmoid(pre_h)
    h1_sample = (rh_ref[...] < h1_mean).astype(jnp.bfloat16)

    # ---- sample_v_given_hu (vis_type == 'binary'):
    #      sigmoid(h @ W.T + u @ A + b), Bernoulli ----
    # assemble [h1_sample | u] in scratch so stage 2 is also a single matmul
    hu_ref[:, :nhid_p] = h1_sample
    hu_ref[:, nhid_p:] = vu[:, nvis_p:]
    pre_v = jnp.dot(hu_ref[...], wv_ref[...], preferred_element_type=jnp.float32) + b_ref[...]
    v1_mean = jax.nn.sigmoid(pre_v)
    out_ref[...] = (rv_ref[...] < v1_mean).astype(jnp.float32)


def cgbrbm_forward(v, u, W, Bmat, c, A, b, key, *, tile_b=None):
    """CGBRBM.forward: returns v1_sample with the same shape/dtype as v."""
    batch, nvis = v.shape
    ncond = u.shape[1]
    nhid = W.shape[1]

    nvis_p = _round_up(nvis, 128)
    nhid_p = _round_up(nhid, 128)
    ncond_p = _round_up(ncond, 128)
    if tile_b is None:
        tile_b = min(256, _round_up(batch, 8))
    batch_p = _round_up(batch, tile_b)

    k1 = nvis_p + ncond_p  # stage-1 contraction dim
    k2 = nhid_p + ncond_p  # stage-2 contraction dim

    f32 = jnp.float32

    # [v | u] padded + concatenated along features (fuses v@W and u@B into one matmul)
    vu = jnp.zeros((batch_p, k1), f32)
    vu = vu.at[:batch, :nvis].set(v.astype(f32))
    vu = vu.at[:batch, nvis_p:nvis_p + ncond].set(u.astype(f32))

    # stacked stage-1 weights [W ; B] -> (k1, nhid_p), bf16 for the MXU
    wh = jnp.zeros((k1, nhid_p), f32)
    wh = wh.at[:nvis, :nhid].set(W)
    wh = wh.at[nvis_p:nvis_p + ncond, :nhid].set(Bmat)
    wh = wh.astype(jnp.bfloat16)

    # stacked stage-2 weights [W.T ; A] -> (k2, nvis_p), bf16 (no in-kernel transpose)
    wv = jnp.zeros((k2, nvis_p), f32)
    wv = wv.at[:nhid, :nvis].set(W.T)
    wv = wv.at[nhid_p:nhid_p + ncond, :nvis].set(A)
    wv = wv.astype(jnp.bfloat16)

    c_p = jnp.zeros((1, nhid_p), f32).at[:, :nhid].set(c)
    b_p = jnp.zeros((1, nvis_p), f32).at[:, :nvis].set(b)

    # uniforms for the two Bernoulli draws (compare happens in-kernel)
    kh, kv = jax.random.split(key)
    r_h = jax.random.uniform(kh, (batch_p, nhid_p), f32)
    r_v = jax.random.uniform(kv, (batch_p, nvis_p), f32)

    grid = (batch_p // tile_b,)
    kernel = functools.partial(_cgbrbm_kernel, nvis_p, nhid_p)

    out = pl.pallas_call(
        kernel,
        out_shape=jax.ShapeDtypeStruct((batch_p, nvis_p), f32),
        grid_spec=pltpu.PrefetchScalarGridSpec(
            num_scalar_prefetch=0,
            grid=grid,
            in_specs=[
                pl.BlockSpec((tile_b, k1), lambda i: (i, 0)),      # [v | u] (batch-tiled)
                pl.BlockSpec((tile_b, nhid_p), lambda i: (i, 0)),  # r_h
                pl.BlockSpec((tile_b, nvis_p), lambda i: (i, 0)),  # r_v
                pl.BlockSpec((k1, nhid_p), lambda i: (0, 0)),      # stacked [W ; B]
                pl.BlockSpec((1, nhid_p), lambda i: (0, 0)),       # c
                pl.BlockSpec((k2, nvis_p), lambda i: (0, 0)),      # stacked [W.T ; A]
                pl.BlockSpec((1, nvis_p), lambda i: (0, 0)),       # b
            ],
            out_specs=pl.BlockSpec((tile_b, nvis_p), lambda i: (i, 0)),
            scratch_shapes=[pltpu.VMEM((tile_b, k2), jnp.bfloat16)],
        ),
        compiler_params=pltpu.CompilerParams(
            dimension_semantics=("parallel",),       # shards batch tiles across TCs on v7x
            vmem_limit_bytes=48 * 1024 * 1024,       # fits v7x's smaller scoped VMEM
        ),
    )(vu, r_h, r_v, wh, c_p, wv, b_p)

    return out[:batch, :nvis]


if __name__ == "__main__":
    # small shapes consistent with the module's __init__
    batch, ncond, nvis, nhid = 8, 4, 16, 32

    key = jax.random.PRNGKey(0)
    k_w, k_a, k_b, k_v, k_u, k_s = jax.random.split(key, 6)

    # deterministic parameter init, matching torch.randn(...)*0.1 / zeros
    W = (jax.random.normal(k_w, (nvis, nhid)) * 0.1).astype(jnp.float32)
    b = jnp.zeros((1, nvis), jnp.float32)
    c = jnp.zeros((1, nhid), jnp.float32)
    A = (jax.random.normal(k_a, (ncond, nvis)) * 0.1).astype(jnp.float32)
    Bmat = (jax.random.normal(k_b, (ncond, nhid)) * 0.1).astype(jnp.float32)  # auxillary=True

    # binary visible data + conditioning data
    visible_data = jax.random.bernoulli(k_v, 0.5, (batch, nvis)).astype(jnp.float32)
    cond_data = jax.random.normal(k_u, (batch, ncond)).astype(jnp.float32)

    v1_sample = cgbrbm_forward(visible_data, cond_data, W, Bmat, c, A, b, k_s)
    v1_sample = jax.block_until_ready(v1_sample)

    assert v1_sample.shape == (batch, nvis)
    assert v1_sample.dtype == jnp.float32
    # binary visible units: samples must be 0/1
    assert bool(jnp.all((v1_sample == 0.0) | (v1_sample == 1.0)))

    print("KERNEL_OK")
</pallas_src>

<mosaic_0001>
module attributes {stable_mosaic.version = 11 : i64} {
  func.func @_cgbrbm_kernel(%arg0: i32, %arg1: memref<8x256xf32, #tpu.memory_space<vmem>>, %arg2: memref<8x128xf32, #tpu.memory_space<vmem>>, %arg3: memref<8x128xf32, #tpu.memory_space<vmem>>, %arg4: memref<256x128xbf16, #tpu.memory_space<vmem>>, %arg5: memref<1x128xf32, #tpu.memory_space<vmem>>, %arg6: memref<256x128xbf16, #tpu.memory_space<vmem>>, %arg7: memref<1x128xf32, #tpu.memory_space<vmem>>, %arg8: memref<8x128xf32, #tpu.memory_space<vmem>>, %arg9: memref<8x256xbf16, #tpu.memory_space<vmem>>) attributes {dimension_semantics = [#tpu.dimension_semantics<parallel>], iteration_bounds = array<i64: 1>, scalar_prefetch = 0 : i64, scratch_operands = 1 : i64, tpu.core_type = #tpu.core_type<tc>, window_params = [{transform_indices = @transform_0, window_bounds = array<i64: 8, 256>}, {transform_indices = @transform_1, window_bounds = array<i64: 8, 128>}, {transform_indices = @transform_2, window_bounds = array<i64: 8, 128>}, {pipeline_mode = #tpu.pipeline_mode<synchronous>, transform_indices = @transform_3, window_bounds = array<i64: 256, 128>}, {pipeline_mode = #tpu.pipeline_mode<synchronous>, transform_indices = @transform_4, window_bounds = array<i64: 1, 128>}, {pipeline_mode = #tpu.pipeline_mode<synchronous>, transform_indices = @transform_5, window_bounds = array<i64: 256, 128>}, {pipeline_mode = #tpu.pipeline_mode<synchronous>, transform_indices = @transform_6, window_bounds = array<i64: 1, 128>}, {transform_indices = @transform_7, window_bounds = array<i64: 8, 128>}]} {
    %c0 = arith.constant 0 : index
    %c0_0 = arith.constant 0 : index
    %0 = vector.load %arg1[%c0, %c0_0] : memref<8x256xf32, #tpu.memory_space<vmem>>, vector<8x256xf32>
    %1 = arith.truncf %0 : vector<8x256xf32> to vector<8x256xbf16>
    %c0_1 = arith.constant 0 : index
    %c0_2 = arith.constant 0 : index
    %2 = vector.load %arg4[%c0_1, %c0_2] : memref<256x128xbf16, #tpu.memory_space<vmem>>, vector<256x128xbf16>
    %cst = arith.constant dense<0.000000e+00> : vector<8x128xf32>
    %3 = tpu.matmul %1, %2, %cst {dimension_numbers = #tpu.dot_dimension_numbers<[1], [0], [0], [1], [0, 0, 1, 1], [], []>} : vector<8x256xbf16>, vector<256x128xbf16>, vector<8x128xf32> -> vector<8x128xf32>
    %c0_3 = arith.constant 0 : index
    %c0_4 = arith.constant 0 : index
    %4 = vector.load %arg5[%c0_3, %c0_4] : memref<1x128xf32, #tpu.memory_space<vmem>>, vector<1x128xf32>
    %5 = vector.broadcast %4 : vector<1x128xf32> to vector<8x128xf32>
    %6 = arith.addf %3, %5 : vector<8x128xf32>
    %7 = arith.negf %6 : vector<8x128xf32>
    %8 = math.exp %7 : vector<8x128xf32>
    %cst_5 = arith.constant 1.000000e+00 : f32
    %9 = vector.broadcast %cst_5 : f32 to vector<8x128xf32>
    %10 = arith.addf %9, %8 : vector<8x128xf32>
    %11 = arith.divf %9, %10 : vector<8x128xf32>
    %c0_6 = arith.constant 0 : index
    %c0_7 = arith.constant 0 : index
    %12 = vector.load %arg2[%c0_6, %c0_7] : memref<8x128xf32, #tpu.memory_space<vmem>>, vector<8x128xf32>
    %13 = arith.cmpf olt, %12, %11 : vector<8x128xf32>
    %14 = arith.extui %13 : vector<8x128xi1> to vector<8x128xi32>
    %15 = arith.sitofp %14 : vector<8x128xi32> to vector<8x128xf32>
    %16 = arith.truncf %15 : vector<8x128xf32> to vector<8x128xbf16>
    %c0_8 = arith.constant 0 : index
    %c0_9 = arith.constant 0 : index
    %17 = vector.load %arg9[%c0_8, %c0_9] : memref<8x256xbf16, #tpu.memory_space<vmem>>, vector<8x128xbf16>
    tpu.vector_store %arg9[%c0_8, %c0_9], %16 {strides = array<i32>} : memref<8x256xbf16, #tpu.memory_space<vmem>>, vector<8x128xbf16>,
    %18 = vector.extract_strided_slice %1 {offsets = [0, 128], sizes = [8, 128], strides = [1, 1]} : vector<8x256xbf16> to vector<8x128xbf16>
    %c0_10 = arith.constant 0 : index
    %c128 = arith.constant 128 : index
    %19 = vector.load %arg9[%c0_10, %c128] : memref<8x256xbf16, #tpu.memory_space<vmem>>, vector<8x128xbf16>
    tpu.vector_store %arg9[%c0_10, %c128], %18 {strides = array<i32>} : memref<8x256xbf16, #tpu.memory_space<vmem>>, vector<8x128xbf16>,
    %c0_11 = arith.constant 0 : index
    %c0_12 = arith.constant 0 : index
    %20 = vector.load %arg9[%c0_11, %c0_12] : memref<8x256xbf16, #tpu.memory_space<vmem>>, vector<8x256xbf16>
    %c0_13 = arith.constant 0 : index
    %c0_14 = arith.constant 0 : index
    %21 = vector.load %arg6[%c0_13, %c0_14] : memref<256x128xbf16, #tpu.memory_space<vmem>>, vector<256x128xbf16>
    %cst_15 = arith.constant dense<0.000000e+00> : vector<8x128xf32>
    %22 = tpu.matmul %20, %21, %cst_15 {dimension_numbers = #tpu.dot_dimension_numbers<[1], [0], [0], [1], [0, 0, 1, 1], [], []>} : vector<8x256xbf16>, vector<256x128xbf16>, vector<8x128xf32> -> vector<8x128xf32>
    %c0_16 = arith.constant 0 : index
    %c0_17 = arith.constant 0 : index
    %23 = vector.load %arg7[%c0_16, %c0_17] : memref<1x128xf32, #tpu.memory_space<vmem>>, vector<1x128xf32>
    %24 = vector.broadcast %23 : vector<1x128xf32> to vector<8x128xf32>
    %25 = arith.addf %22, %24 : vector<8x128xf32>
    %26 = arith.negf %25 : vector<8x128xf32>
    %27 = math.exp %26 : vector<8x128xf32>
    %cst_18 = arith.constant 1.000000e+00 : f32
    %28 = vector.broadcast %cst_18 : f32 to vector<8x128xf32>
    %29 = arith.addf %28, %27 : vector<8x128xf32>
    %30 = arith.divf %28, %29 : vector<8x128xf32>
    %c0_19 = arith.constant 0 : index
    %c0_20 = arith.constant 0 : index
    %31 = vector.load %arg3[%c0_19, %c0_20] : memref<8x128xf32, #tpu.memory_space<vmem>>, vector<8x128xf32>
    %32 = arith.cmpf olt, %31, %30 : vector<8x128xf32>
    %33 = arith.extui %32 : vector<8x128xi1> to vector<8x128xi32>
    %34 = arith.sitofp %33 : vector<8x128xi32> to vector<8x128xf32>
    %c0_21 = arith.constant 0 : index
    %c0_22 = arith.constant 0 : index
    %35 = vector.load %arg8[%c0_21, %c0_22] : memref<8x128xf32, #tpu.memory_space<vmem>>, vector<8x128xf32>
    tpu.vector_store %arg8[%c0_21, %c0_22], %34 {strides = array<i32>} : memref<8x128xf32, #tpu.memory_space<vmem>>, vector<8x128xf32>,
    return
  }
  func.func @transform_0(%arg0: i32) -> (i32, i32) {
    %c0_i32 = arith.constant 0 : i32
    %c0_i32_0 = arith.constant 0 : i32
    return %arg0, %c0_i32 : i32, i32
  }
  func.func @transform_1(%arg0: i32) -> (i32, i32) {
    %c0_i32 = arith.constant 0 : i32
    %c0_i32_0 = arith.constant 0 : i32
    return %arg0, %c0_i32 : i32, i32
  }
  func.func @transform_2(%arg0: i32) -> (i32, i32) {
    %c0_i32 = arith.constant 0 : i32
    %c0_i32_0 = arith.constant 0 : i32
    return %arg0, %c0_i32 : i32, i32
  }
  func.func @transform_3(%arg0: i32) -> (i32, i32) {
    %c0_i32 = arith.constant 0 : i32
    %c0_i32_0 = arith.constant 0 : i32
    %c0_i32_1 = arith.constant 0 : i32
    return %c0_i32, %c0_i32_0 : i32, i32
  }
  func.func @transform_4(%arg0: i32) -> (i32, i32) {
    %c0_i32 = arith.constant 0 : i32
    %c0_i32_0 = arith.constant 0 : i32
    %c0_i32_1 = arith.constant 0 : i32
    return %c0_i32, %c0_i32_0 : i32, i32
  }
  func.func @transform_5(%arg0: i32) -> (i32, i32) {
    %c0_i32 = arith.constant 0 : i32
    %c0_i32_0 = arith.constant 0 : i32
    %c0_i32_1 = arith.constant 0 : i32
    return %c0_i32, %c0_i32_0 : i32, i32
  }
  func.func @transform_6(%arg0: i32) -> (i32, i32) {
    %c0_i32 = arith.constant 0 : i32
    %c0_i32_0 = arith.constant 0 : i32
    %c0_i32_1 = arith.constant 0 : i32
    return %c0_i32, %c0_i32_0 : i32, i32
  }
  func.func @transform_7(%arg0: i32) -> (i32, i32) {
    %c0_i32 = arith.constant 0 : i32
    %c0_i32_0 = arith.constant 0 : i32
    return %arg0, %c0_i32 : i32, i32
  }
}

</mosaic_0001>

<bundles_post_ra>
// kernel: tpu_custom_call.1
= control target key start
LH: loop header
LB: loop body
LE: loop exit
PB: predicated region body
PF: predicated region fallthrough
CT: control target
= control target key end

     0   :  { %12 = vsyncpa [#allocation4], 0  ;;  %s843_s0 = inlined_call_operand.hbm [shape: f32[8,256], index: 0, kind: input, shape index: {}]   ;;  %s844_s1 = inlined_call_operand.hbm [shape: f32[8,128], index: 1, kind: input, shape index: {}]   ;;  %s845_s2 = inlined_call_operand.hbm [shape: f32[8,128], index: 2, kind: input, shape index: {}]   ;;  %s846_s3 = inlined_call_operand.hbm [shape: bf16[256,128], index: 3, kind: input, shape index: {}]   ;;  %s847_s4 = inlined_call_operand.vmem [shape: f32[1,128], index: 4, kind: input, shape index: {}]   ;;  %s848_s5 = inlined_call_operand.hbm [shape: bf16[256,128], index: 5, kind: input, shape index: {}]   ;;  %s849_s6 = inlined_call_operand.vmem [shape: f32[1,128], index: 6, kind: input, shape index: {}]   ;;  %s850_s7 = inlined_call_operand.hbm [shape: f32[8,128], index: 7, kind: output, shape index: {}]  }
   0x1   :  { %13 = vsyncpa [#allocation7], 0 }
   0x2   :  { %14 = vsyncpa [#allocation10], 0 }
   0x3   :  { %15 = vsyncpa [#allocation5], 0  ;;  %s763_s24 = smov [#allocation6]   ;;  %s764_s26 = smov [#allocation9]  }
   0x4   :  { %s32_s25 = sshll.u32 %s763_s24, 4  ;;  %s51_s27 = sshll.u32 %s764_s26, 4  ;;  %s33_s25 = int_to_ptr.vmem [resolvable:$true] %s32_s25  ;;  %s52_s27 = int_to_ptr.vmem [resolvable:$true] %s51_s27 }
   0x5   :  { %s643_s28 = scalar_lea.vmem %s33_s25, 128  ;;  %p648_p1 = scmp.lt.s32.totalorder %s33_s25, %s33_s25 }
   0x6   :  { %p644_p0 = scmp.ne.s32.totalorder %s33_s25, %s643_s28  ;;  %p649_p2 = scmp.lt.s32.totalorder %s643_s28, %s643_s28 }
   0x8   :  { %p650_p3 = por %p649_p2, %p648_p1 }
   0xa   :  { %p651_p4 = pnand %p650_p3, %p644_p0 }
   0xc   :  { %654 = shalt.err (!%p651_p4)
}
   0xd   :  { %35 = dma.hbm_to_vmem [thread:$0]  %s844_s1, 128, %s33_s25, [#allocation7]  }
   0xe   :  { %s663_s8 = scalar_lea.vmem %s52_s27, 2048  ;;  %p668_p6 = scmp.lt.s32.totalorder %s52_s27, %s52_s27 }
   0xf   :  { %p664_p5 = scmp.ne.s32.totalorder %s52_s27, %s663_s8  ;;  %p669_p7 = scmp.lt.s32.totalorder %s663_s8, %s663_s8 }
  0x11   :  { %p670_p8 = por %p669_p7, %p668_p6 }
  0x13   :  { %p671_p9 = pnand %p670_p8, %p664_p5 }
  0x15   :  { %674 = shalt.err (!%p671_p9)
}
  0x16   :  { %s765_s9 = smov 64   ;;  %s766_s10 = smov 4  }
  0x17   :  { %57 = dma.hbm_to_vmem [thread:$0]  %s846_s3, 2048, %s52_s27, [#allocation10], %s765_s9, %s765_s9, %s766_s10  }
  0x18   :  { %s767_s13 = smov [#allocation3]   ;;  %s768_s15 = smov [#allocation8]  }
  0x19   :  { %s22_s14 = sshll.u32 %s767_s13, 4  ;;  %s42_s1 = sshll.u32 %s768_s15, 4  ;;  %s23_s14 = int_to_ptr.vmem [resolvable:$true] %s22_s14  ;;  %s43_s1 = int_to_ptr.vmem [resolvable:$true] %s42_s1 }
  0x1a   :  { %s683_s16 = scalar_lea.vmem %s23_s14, 256  ;;  %p688_p11 = scmp.lt.s32.totalorder %s23_s14, %s23_s14 }
  0x1b   :  { %p684_p10 = scmp.ne.s32.totalorder %s23_s14, %s683_s16  ;;  %p689_p12 = scmp.lt.s32.totalorder %s683_s16, %s683_s16 }
  0x1d   :  { %p690_p13 = por %p689_p12, %p688_p11 }
  0x1f   :  { %p691_p0 = pnand %p690_p13, %p684_p10 }
  0x21   :  { %694 = shalt.err (!%p691_p0)
}
  0x22   :  { %25 = dma.hbm_to_vmem [thread:$0]  %s843_s0, 256, %s23_s14, [#allocation4]  }
  0x23   :  { %s703_s19 = scalar_lea.vmem %s43_s1, 128  ;;  %p708_p2 = scmp.lt.s32.totalorder %s43_s1, %s43_s1 }
  0x24   :  { %p704_p1 = scmp.ne.s32.totalorder %s43_s1, %s703_s19  ;;  %p709_p3 = scmp.lt.s32.totalorder %s703_s19, %s703_s19 }
  0x26   :  { %p710_p4 = por %p709_p3, %p708_p2 }
  0x28   :  { %p711_p5 = pnand %p710_p4, %p704_p1 }
  0x2a   :  { %714 = shalt.err (!%p711_p5)
}
  0x2b   :  { %45 = dma.hbm_to_vmem [thread:$0]  %s845_s2, 128, %s43_s1, [#allocation7]  }
  0x2c   :  { %s769_s21 = smov [#allocation11]  }
  0x2d   :  { %s65_s22 = sshll.u32 %s769_s21, 4  ;;  %s66_s22 = int_to_ptr.vmem [resolvable:$true] %s65_s22 }
  0x2e   :  { %s723_s23 = scalar_lea.vmem %s66_s22, 2048  ;;  %p728_p7 = scmp.lt.s32.totalorder %s66_s22, %s66_s22 }
  0x2f   :  { %p724_p6 = scmp.ne.s32.totalorder %s66_s22, %s723_s23  ;;  %p729_p8 = scmp.lt.s32.totalorder %s723_s23, %s723_s23 }
  0x31   :  { %p730_p9 = por %p729_p8, %p728_p7 }
  0x33   :  { %p731_p10 = pnand %p730_p9, %p724_p6 }
  0x35   :  { %734 = shalt.err (!%p731_p10)
}
  0x36   :  { %71 = dma.hbm_to_vmem [thread:$0]  %s848_s5, 2048, %s66_s22, [#allocation10], %s765_s9, %s765_s9, %s766_s10  }
  0x37   :  { %755 = dma.done.wait [#allocation4], 256  }
  0x38   :  { %756 = vsyncadd [#allocation4], 4294967040 }
  0x39   :  { %757 = dma.done.wait [#allocation7], 256  }
  0x3a   :  { %758 = vsyncadd [#allocation7], 4294967040 }
  0x3b   :  { %759 = dma.done.wait [#allocation10], 4096  }
  0x3c   :  { %760 = vsyncadd [#allocation10], 4294963200  ;;  %v595_v0 = vld [vmem:[#allocation9 + $0x78] sm:$0xff]   ;;  %v597_v2 = vld [vmem:[#allocation9 + $0x70] sm:$0xff]   ;;  %v770_v48 = vmov 1.0|1.0  }
  0x3d   :  { %v596_v1 = vld [vmem:[#allocation9 + $0x38] sm:$0xff]   ;;  %541 = vmatprep.subr.bf16.mxu0 %v595_v0  ;;  %v598_v3 = vld [vmem:[#allocation9 + $0x30] sm:$0xff]   ;;  %v599_v4 = vld [vmem:[#allocation9 + $0x68] sm:$0xff]   ;;  %v772_v61 = vmov 0.0  }
  0x3e   :  { %542 = vmatpush3.bf16.msra.mxu0 %v596_v1  ;;  %v600_v5 = vld [vmem:[#allocation9 + $0x28] sm:$0xff]   ;;  %v601_v6 = vld [vmem:[#allocation9 + $0x60] sm:$0xff]   ;;  %v603_v8 = vld [vmem:[#allocation9 + $0x58] sm:$0xff]  }
  0x3f   :  { %543 = vmatprep.subr.bf16.mxu0 %v597_v2  ;;  %v602_v7 = vld [vmem:[#allocation9 + $0x20] sm:$0xff]   ;;  %v604_v9 = vld [vmem:[#allocation9 + $0x18] sm:$0xff]   ;;  %v605_v10 = vld [vmem:[#allocation9 + $0x50] sm:$0xff]  }
  0x40   :  { %v91_v11 = vld [vmem:[#allocation3 + $0x8] sm:$0xff]  ;;  %v606_v12 = vld [vmem:[#allocation9 + $0x10] sm:$0xff]   ;;  %v609_v16 = vld [vmem:[#allocation9 + $0x40] sm:$0xff]  }
  0x41   :  { %v93_v13 = vpack.c.bf16 %v91_v11, %v91_v11  ;;  %v607_v14 = vld [vmem:[#allocation9 + $0x48] sm:$0xff]   ;;  %v610_v17 = vld [vmem:[#allocation9] sm:$0xff]   ;;  %v611_v20 = vld [vmem:[#allocation11 + $0x78] sm:$0xff]  }
  0x42   :  { %544 = vmatpush3.bf16.msra.mxu0 %v598_v3  ;;  %v608_v15 = vld [vmem:[#allocation9 + $0x8] sm:$0xff]   ;;  %v90_v18 = vld [vmem:[#allocation3] sm:$0xff]  ;;  %v612_v21 = vld [vmem:[#allocation11 + $0x38] sm:$0xff]   ;;  %563 = vmatprep.subr.bf16.mxu1 %v611_v20 }
  0x43   :  { %545 = vmatprep.subr.bf16.mxu0 %v599_v4  ;;  %261 = vmatprep.mubr.bf16.mxu0 %v93_v13  ;;  %v92_v19 = vpack.c.bf16 %v90_v18, %v90_v18  ;;  %v613_v22 = vld [vmem:[#allocation11 + $0x70] sm:$0xff]   ;;  %v615_v24 = vld [vmem:[#allocation11 + $0x68] sm:$0xff]   ;;  %v617_v26 = vld [vmem:[#allocation11 + $0x60] sm:$0xff]  }
  0x44   :  { %457 = vmatprep.mubr.bf16.mxu1 %v93_v13  ;;  %564 = vmatpush3.bf16.msra.mxu1 %v612_v21  ;;  %v614_v23 = vld [vmem:[#allocation11 + $0x30] sm:$0xff]   ;;  %v616_v25 = vld [vmem:[#allocation11 + $0x28] sm:$0xff]   ;;  %v618_v27 = vld [vmem:[#allocation11 + $0x20] sm:$0xff]  }
  0x45   :  { %565 = vmatprep.subr.bf16.mxu1 %v613_v22  ;;  %v619_v28 = vld [vmem:[#allocation11 + $0x58] sm:$0xff]   ;;  %v621_v30 = vld [vmem:[#allocation11 + $0x50] sm:$0xff]   ;;  %v623_v32 = vld [vmem:[#allocation11 + $0x48] sm:$0xff]  }
  0x46   :  { %546 = vmatpush3.bf16.msra.mxu0 %v600_v5  ;;  %v620_v29 = vld [vmem:[#allocation11 + $0x18] sm:$0xff]   ;;  %v622_v31 = vld [vmem:[#allocation11 + $0x10] sm:$0xff]   ;;  %v624_v33 = vld [vmem:[#allocation11 + $0x8] sm:$0xff]  }
  0x47   :  { %547 = vmatprep.subr.bf16.mxu0 %v601_v6  ;;  %v625_v34 = vld [vmem:[#allocation11 + $0x40] sm:$0xff]   ;;  %v275_v46 = vld [vmem:[#allocation6] sm:$0xff]  ;;  %v471_v59 = vld [vmem:[#allocation8] sm:$0xff] }
  0x48   :  { %566 = vmatpush3.bf16.msra.mxu1 %v614_v23  ;;  %v626_v35 = vld [vmem:[#allocation11] sm:$0xff]  }
  0x49   :  { %567 = vmatprep.subr.bf16.mxu1 %v615_v24  ;;  %v493_v37 = vld [vmem:[%s847_s4] ss:$0 sm:$0xff]  ;;  %s771_s4 = smov [#allocation12]  }
  0x4a   :  { %548 = vmatpush3.bf16.msra.mxu0 %v602_v7  ;;  %v512_v50 = vld [vmem:[%s849_s6] ss:$0 sm:$0xff]  ;;  %s482_s27 = sshll.u32 %s771_s4, 4  ;;  %s483_s27 = int_to_ptr.vmem [resolvable:$true] %s482_s27 }
  0x4b   :  { %549 = vmatprep.subr.bf16.mxu0 %v603_v8  ;;  %s735_s6 = scalar_lea.vmem %s483_s27, 128  ;;  %p740_p12 = scmp.lt.s32.totalorder %s483_s27, %s483_s27 }
  0x4c   :  { %568 = vmatpush3.bf16.msra.mxu1 %v616_v25  ;;  %p736_p11 = scmp.ne.s32.totalorder %s483_s27, %s735_s6  ;;  %p741_p13 = scmp.lt.s32.totalorder %s735_s6, %s735_s6 }
  0x4d   :  { %569 = vmatprep.subr.bf16.mxu1 %v617_v26 }
  0x4e   :  { %550 = vmatpush3.bf16.msra.mxu0 %v604_v9  ;;  %p742_p0 = por %p741_p13, %p740_p12 }
  0x4f   :  { %551 = vmatprep.subr.bf16.mxu0 %v605_v10 }
  0x50   :  { %570 = vmatpush3.bf16.msra.mxu1 %v618_v27  ;;  %p743_p1 = pnand %p742_p0, %p736_p11 }
  0x51   :  { %571 = vmatprep.subr.bf16.mxu1 %v619_v28 }
  0x52   :  { %552 = vmatpush3.bf16.msra.mxu0 %v606_v12 }
  0x53   :  { %553 = vmatprep.subr.bf16.mxu0 %v607_v14 }
  0x54   :  { %572 = vmatpush3.bf16.msra.mxu1 %v620_v29 }
  0x55   :  { %573 = vmatprep.subr.bf16.mxu1 %v621_v30 }
  0x56   :  { %554 = vmatpush3.bf16.msra.mxu0 %v608_v15 }
  0x57   :  { %555 = vmatprep.subr.bf16.mxu0 %v609_v16 }
  0x58   :  { %574 = vmatpush3.bf16.msra.mxu1 %v622_v31 }
  0x59   :  { %575 = vmatprep.subr.bf16.mxu1 %v623_v32 }
  0x5a   :  { %556 = vmatpush3.bf16.msra.mxu0 %v610_v17 }
  0x5c   :  { %576 = vmatpush3.bf16.msra.mxu1 %v624_v33 }
  0x5d   :  { %262 = vmatmul.mubr.bf16.vlgmr.msra.gmra.mxu0 %v92_v19  ;;  %577 = vmatprep.subr.bf16.mxu1 %v625_v34 }
  0x60   :  { %578 = vmatpush3.bf16.msra.mxu1 %v626_v35 }
 0x11d   :  { %v557_v36 = vpop.f32.mrf.mxu0 }
 0x11f   :  { %v558_v38 = vpop.f32.mrf.mxu0 }
 0x120   :  { %v559_v39 = vadd.f32 %v558_v38, %v557_v36 }
 0x121   :  { %v560_v40 = vpop.f32.mrf.mxu0 }
 0x122   :  { %v264_v41 = vadd.f32 %v559_v39, %v493_v37 }
 0x123   :  { %v561_v42 = vpop.f32.mrf.mxu0 }
 0x124   :  { %v510_v43 = vmul.f32 -1.442695, %v264_v41 }
 0x126   :  { %627 = vpow2.f32 %v510_v43 }
 0x133   :  { %v628_v44 = vpop.eup %627 }
 0x134   :  { %v272_v45 = vadd.f32 1.0, %v628_v44 }
 0x136   :  { %629 = vrcp.f32 %v272_v45 }
 0x143   :  { %v630_v47 = vpop.eup %629 }
 0x144   :  { %vm276_vm0 = vcmp.lt.f32.partialorder %v275_v46, %v630_v47 }
 0x145   :  { %vm539_vm1 = vmpackc.low %vm276_vm0, %vm276_vm0 }
 0x146   :  { %540 = vmatmul.mubr.msk.bf16.vlgmr.msra.gmra.mxu1 %vm539_vm1, %v770_v48 }
 0x206   :  { %v579_v49 = vpop.f32.mrf.mxu1 }
 0x208   :  { %v580_v51 = vpop.f32.mrf.mxu1 }
 0x209   :  { %v581_v52 = vadd.f32 %v580_v51, %v579_v49 }
 0x20a   :  { %v582_v53 = vpop.f32.mrf.mxu1 }
 0x20b   :  { %v460_v54 = vadd.f32 %v581_v52, %v512_v50 }
 0x20c   :  { %v583_v55 = vpop.f32.mrf.mxu1 }
 0x20d   :  { %v531_v56 = vmul.f32 -1.442695, %v460_v54 }
 0x20f   :  { %631 = vpow2.f32 %v531_v56 }
 0x21c   :  { %v632_v57 = vpop.eup %631 }
 0x21d   :  { %v468_v58 = vadd.f32 1.0, %v632_v57 }
 0x21f   :  { %633 = vrcp.f32 %v468_v58 }
 0x22c   :  { %v634_v60 = vpop.eup %633 }
 0x22d   :  { %vm472_vm2 = vcmp.lt.f32.partialorder %v471_v59, %v634_v60 }
 0x22e   :  { %v532_v62 = vsel %vm472_vm2, 1.0, %v772_v61 }
 0x22f   :  { %475 = vst [vmem:[#allocation12] sm:$0xff] %v532_v62 }
 0x230   :  { %746 = shalt.err (!%p743_p1)
}
 0x231   :  { %485 = dma.vmem_to_hbm [thread:$0]  %s483_s27, 128, %s850_s7, [#allocation5]  }
 0x232   :  { %761 = dma.done.wait [#allocation5], 128  }
 0x233   :  { %762 = vsyncadd [#allocation5], 4294967168 }
 0x234   :  { %489 = vsyncpa [#allocation4], 1 }
 0x235   :  { %490 = vsyncpa [#allocation7], 1 }
 0x236   :  { %491 = vsyncpa [#allocation10], 1 }
 0x237   :  { %492 = vsyncpa [#allocation5], 1 }

</bundles_post_ra>
